<compile_context>
chip_gen: v7x
topology: tpu7x:2x2x1
jax: 0.10.0
libtpu: 0.0.40
codegen_flags: <defaults>
</compile_context>

<pallas_src>
import functools

import jax
import jax.numpy as jnp
from jax.experimental import pallas as pl
from jax.experimental.pallas import tpu as pltpu

SMOOTH = 1e-5                     # matches the local `smooth = 1e-05` in DiceLoss.forward
_TARGET_PIXELS = 256 * 1024       # ~256K pixels / grid step (f32 pred tile = 3 MiB)
_VMEM_LIMIT = 40 * 1024 * 1024    # > v5e's 16 MiB default, < v7x's 64 MiB physical


def _cdiv(a, b):
    return -(-a // b)


def _sublane_align(dtype):
    # sublane multiple required for the block row axis given the element width
    return {1: 32, 2: 16}.get(jnp.dtype(dtype).itemsize, 8)


def _joint_loss_kernel(pred_ref, gt_ref, ce_ref, inter_ref, z_ref, y_ref, *,
                       num_classes, rows_per_block, blocks_per_split,
                       valid_pixels, needs_mask):
    C = num_classes
    TH = rows_per_block
    j = pl.program_id(2)

    @pl.when(j == 0)
    def _():
        ce_ref[...] = jnp.zeros_like(ce_ref)
        inter_ref[...] = jnp.zeros_like(inter_ref)
        z_ref[...] = jnp.zeros_like(z_ref)
        y_ref[...] = jnp.zeros_like(y_ref)

    gt = gt_ref[...]                                   # (TH, 128) integer labels
    if gt.dtype != jnp.int32:
        gt = gt.astype(jnp.int32)                      # widen in regs; HBM stays narrow
    xs = [pred_ref[c].astype(jnp.float32) for c in range(C)]   # C x (TH, 128) planes

    if needs_mask:
        # Padded pixels, ragged tail rows and clamped overflow blocks of the split
        # axis: any pixel whose flat index >= H*W contributes exactly zero.
        jg = pl.program_id(0) * blocks_per_split + j   # unclamped global block index
        flat = (jax.lax.broadcasted_iota(jnp.int32, (TH, 128), 0) * 128
                + jax.lax.broadcasted_iota(jnp.int32, (TH, 128), 1))
        mask = flat < (valid_pixels - jg * (TH * 128))
        gt = jnp.where(mask, gt, C)                    # out-of-range label: no class hit
    else:
        mask = None

    # Softmax pieces over the class planes: fully elementwise (VPU + EUP only).
    m = xs[0]
    for c in range(1, C):
        m = jnp.maximum(m, xs[c])
    shifted = [x - m for x in xs]
    es = [jnp.exp(sh) for sh in shifted]
    denom = es[0]
    for c in range(1, C):
        denom = denom + es[c]
    inv = pl.reciprocal(denom, approx=False)           # exact: keeps the 1e-5 tolerance
    logd = jnp.log(denom)

    # Select-based gather of shifted[gt]:  -log_softmax[gt] = log(denom) - shifted[gt]
    sel = shifted[C - 1]
    for c in range(C - 2, -1, -1):
        sel = jnp.where(gt == c, shifted[c], sel)
    ce_pix = logd - sel
    if mask is not None:
        ce_pix = jnp.where(mask, ce_pix, 0.0)          # select also kills NaN garbage

    def fold8(x):
        # (TH, 128) -> (8, 128): each (8, 128) slab is one vreg, so this lowers to
        # TH/8 - 1 plain vector adds (no XLU cross-sublane reduction).
        return x.reshape(TH // 8, 8, 128).sum(axis=0)

    # Accumulate into the resident per-(split, image) output blocks.
    ce_ref[...] += fold8(ce_pix)
    for c in range(C):
        p_c = es[c] * inv                              # softmax probability of class c
        hit = gt == c
        inter_ref[c] += fold8(jnp.where(hit, p_c, 0.0))
        z_ref[c] += fold8(p_c if mask is None else jnp.where(mask, p_c, 0.0))
        y_ref[c] += fold8(jnp.where(hit, 1.0, 0.0))


def joint_loss(pred, gt, *, target_pixels=_TARGET_PIXELS):
    """pred: (N, C, H, W) float logits; gt: (N, 1, H, W) integer labels in [0, C)."""
    N, C, H, W = pred.shape
    HW = H * W
    total_pixels = float(N * HW)

    if pred.dtype not in (jnp.float32, jnp.bfloat16):
        pred = pred.astype(jnp.float32)
    if not jnp.issubdtype(gt.dtype, jnp.integer):
        gt = gt.astype(jnp.int32)

    align = max(_sublane_align(pred.dtype), _sublane_align(gt.dtype))
    P = _cdiv(HW, 128)                      # rows of 128 pixels per image
    P_pad = _cdiv(P, align) * align         # sublane-aligned row count
    HW_pad = P_pad * 128

    pred_flat = pred.reshape(N, C, HW)      # metadata-only on contiguous NCHW
    gt_flat = gt.reshape(N, HW)
    if HW_pad != HW:                        # only odd spatial sizes pay a small pad copy
        pred_flat = jnp.pad(pred_flat, ((0, 0), (0, 0), (0, HW_pad - HW)))
        gt_flat = jnp.pad(gt_flat, ((0, 0), (0, HW_pad - HW)))
    pred_r = pred_flat.reshape(N, C, P_pad, 128)
    gt_r = gt_flat.reshape(N, P_pad, 128)

    # Rows of 128 pixels per grid step: ~target_pixels, sublane-aligned.
    th = max(align, (target_pixels // 128 // align) * align)
    th = min(th, P_pad)
    jt = _cdiv(P_pad, th)                   # row-blocks per image
    nsplit = 2 if jt >= 2 else 1            # keep both v7x TensorCores busy at small N
    jps = _cdiv(jt, nsplit)                 # row-blocks per split
    needs_mask = (nsplit * jps * th * 128) != HW

    if nsplit * jps == jt:
        blk = lambda s, j: s * jps + j
    else:                                   # odd jt: clamp the overflow block (masked)
        blk = lambda s, j: jnp.minimum(s * jps + j, jt - 1)

    kernel = functools.partial(
        _joint_loss_kernel, num_classes=C, rows_per_block=th,
        blocks_per_split=jps, valid_pixels=HW, needs_mask=needs_mask)

    ce_out, inter_out, z_out, y_out = pl.pallas_call(
        kernel,
        out_shape=(
            jax.ShapeDtypeStruct((nsplit, N, 8, 128), jnp.float32),      # CE partials
            jax.ShapeDtypeStruct((nsplit, N, C, 8, 128), jnp.float32),   # intersection
            jax.ShapeDtypeStruct((nsplit, N, C, 8, 128), jnp.float32),   # softmax sums
            jax.ShapeDtypeStruct((nsplit, N, C, 8, 128), jnp.float32),   # label sums
        ),
        grid_spec=pltpu.PrefetchScalarGridSpec(
            num_scalar_prefetch=0,
            grid=(nsplit, N, jps),
            in_specs=[
                pl.BlockSpec((None, C, th, 128), lambda s, n, j: (n, 0, blk(s, j), 0)),
                pl.BlockSpec((None, th, 128), lambda s, n, j: (n, blk(s, j), 0)),
            ],
            out_specs=(
                pl.BlockSpec((None, None, 8, 128), lambda s, n, j: (s, n, 0, 0)),
                pl.BlockSpec((None, None, C, 8, 128), lambda s, n, j: (s, n, 0, 0, 0)),
                pl.BlockSpec((None, None, C, 8, 128), lambda s, n, j: (s, n, 0, 0, 0)),
                pl.BlockSpec((None, None, C, 8, 128), lambda s, n, j: (s, n, 0, 0, 0)),
            ),
        ),
        compiler_params=pltpu.CompilerParams(
            dimension_semantics=("parallel", "parallel", "arbitrary"),
            vmem_limit_bytes=_VMEM_LIMIT),
    )(pred_r, gt_r)

    # Tiny epilogue: the only cross-lane reductions plus the CE / dice formulas.
    ce_mean = jnp.sum(ce_out) / total_pixels
    inter = jnp.sum(inter_out, axis=(0, 1, 3, 4))
    z = jnp.sum(z_out, axis=(0, 1, 3, 4))
    y = jnp.sum(y_out, axis=(0, 1, 3, 4))
    dice = 1.0 - jnp.sum((2.0 * inter + SMOOTH) / (z + y + SMOOTH)) / C
    return (ce_mean + dice) * 0.5


def joint_loss_ref(pred, gt):
    """Pure-JAX reference mirroring the PyTorch JointLoss semantics."""
    N, C, H, W = pred.shape
    gt_s = gt.reshape(N, H, W)
    logits = pred.astype(jnp.float32)
    logp = jax.nn.log_softmax(logits, axis=1)
    onehot = jax.nn.one_hot(gt_s, C, axis=1, dtype=jnp.float32)   # (N, C, H, W)
    ce = -jnp.mean(jnp.sum(onehot * logp, axis=1))
    p = jax.nn.softmax(logits, axis=1)
    inter = jnp.sum(p * onehot, axis=(0, 2, 3))
    z = jnp.sum(p, axis=(0, 2, 3))
    y = jnp.sum(onehot, axis=(0, 2, 3))
    dice = 1.0 - jnp.sum((2.0 * inter + SMOOTH) / (z + y + SMOOTH)) / C
    return (ce + dice) / 2.0


if __name__ == "__main__":
    key = jax.random.PRNGKey(0)

    # DiceLoss hard-codes 3 label channels (bg / label1 / label2) => C = 3.
    configs = [
        ((2, 3, 16, 16), _TARGET_PIXELS),   # default tiling (single block per image)
        ((1, 3, 64, 64), 1024),             # multi-block accumulation + dual-TC split
        ((1, 3, 50, 60), 1024),             # ragged / padded tail + clamped block
    ]
    for shape, tp in configs:
        N, C, H, W = shape
        key, k1, k2 = jax.random.split(key, 3)
        pred = jax.random.normal(k1, (N, C, H, W), dtype=jnp.float32)
        gt = jax.random.randint(k2, (N, 1, H, W), 0, C, dtype=jnp.int32)
        out = jax.block_until_ready(joint_loss(pred, gt, target_pixels=tp))
        ref = joint_loss_ref(pred, gt)
        assert jnp.allclose(out, ref, rtol=1e-5, atol=1e-5), (shape, float(out), float(ref))
    print("KERNEL_OK")
</pallas_src>

<mosaic_0001>
module attributes {stable_mosaic.version = 11 : i64} {
  func.func @_joint_loss_kernel(%arg0: i32, %arg1: i32, %arg2: i32, %arg3: memref<1x3x8x128xf32, #tpu.memory_space<vmem>>, %arg4: memref<1x8x128xi32, #tpu.memory_space<vmem>>, %arg5: memref<1x1x8x128xf32, #tpu.memory_space<vmem>>, %arg6: memref<1x1x3x8x128xf32, #tpu.memory_space<vmem>>, %arg7: memref<1x1x3x8x128xf32, #tpu.memory_space<vmem>>, %arg8: memref<1x1x3x8x128xf32, #tpu.memory_space<vmem>>) attributes {dimension_semantics = [#tpu.dimension_semantics<parallel>, #tpu.dimension_semantics<parallel>, #tpu.dimension_semantics<arbitrary>], iteration_bounds = array<i64: 1, 2, 1>, scalar_prefetch = 0 : i64, scratch_operands = 0 : i64, tpu.core_type = #tpu.core_type<tc>, window_params = [{transform_indices = @transform_0, window_bounds = array<i64: 1, 3, 8, 128>}, {transform_indices = @transform_1, window_bounds = array<i64: 1, 8, 128>}, {transform_indices = @transform_2, window_bounds = array<i64: 1, 1, 8, 128>}, {transform_indices = @transform_3, window_bounds = array<i64: 1, 1, 3, 8, 128>}, {transform_indices = @transform_4, window_bounds = array<i64: 1, 1, 3, 8, 128>}, {transform_indices = @transform_5, window_bounds = array<i64: 1, 1, 3, 8, 128>}]} {
    %c0_i32 = arith.constant 0 : i32
    %0 = arith.cmpi eq, %arg2, %c0_i32 : i32
    %1 = arith.extui %0 : i1 to i32
    %c0_i32_0 = arith.constant 0 : i32
    %2 = arith.cmpi ne, %1, %c0_i32_0 : i32
    scf.if %2 {
      %cst_137 = arith.constant 0.000000e+00 : f32
      %155 = vector.broadcast %cst_137 : f32 to vector<8x128xf32>
      %c0_138 = arith.constant 0 : index
      %c0_139 = arith.constant 0 : index
      %c0_140 = arith.constant 0 : index
      %c0_141 = arith.constant 0 : index
      %156 = vector.load %arg5[%c0_138, %c0_139, %c0_140, %c0_141] : memref<1x1x8x128xf32, #tpu.memory_space<vmem>>, vector<1x1x8x128xf32>
      %157 = vector.shape_cast %156 : vector<1x1x8x128xf32> to vector<8x128xf32>
      %158 = vector.shape_cast %155 : vector<8x128xf32> to vector<1x1x8x128xf32>
      tpu.vector_store %arg5[%c0_138, %c0_139, %c0_140, %c0_141], %158 {strides = array<i32>} : memref<1x1x8x128xf32, #tpu.memory_space<vmem>>, vector<1x1x8x128xf32>,
      %cst_142 = arith.constant 0.000000e+00 : f32
      %159 = vector.broadcast %cst_142 : f32 to vector<3x8x128xf32>
      %c0_143 = arith.constant 0 : index
      %c0_144 = arith.constant 0 : index
      %c0_145 = arith.constant 0 : index
      %c0_146 = arith.constant 0 : index
      %c0_147 = arith.constant 0 : index
      %160 = vector.load %arg6[%c0_143, %c0_144, %c0_145, %c0_146, %c0_147] : memref<1x1x3x8x128xf32, #tpu.memory_space<vmem>>, vector<1x1x3x8x128xf32>
      %161 = vector.shape_cast %160 : vector<1x1x3x8x128xf32> to vector<3x8x128xf32>
      %162 = vector.shape_cast %159 : vector<3x8x128xf32> to vector<1x1x3x8x128xf32>
      tpu.vector_store %arg6[%c0_143, %c0_144, %c0_145, %c0_146, %c0_147], %162 {strides = array<i32>} : memref<1x1x3x8x128xf32, #tpu.memory_space<vmem>>, vector<1x1x3x8x128xf32>,
      %cst_148 = arith.constant 0.000000e+00 : f32
      %163 = vector.broadcast %cst_148 : f32 to vector<3x8x128xf32>
      %c0_149 = arith.constant 0 : index
      %c0_150 = arith.constant 0 : index
      %c0_151 = arith.constant 0 : index
      %c0_152 = arith.constant 0 : index
      %c0_153 = arith.constant 0 : index
      %164 = vector.load %arg7[%c0_149, %c0_150, %c0_151, %c0_152, %c0_153] : memref<1x1x3x8x128xf32, #tpu.memory_space<vmem>>, vector<1x1x3x8x128xf32>
      %165 = vector.shape_cast %164 : vector<1x1x3x8x128xf32> to vector<3x8x128xf32>
      %166 = vector.shape_cast %163 : vector<3x8x128xf32> to vector<1x1x3x8x128xf32>
      tpu.vector_store %arg7[%c0_149, %c0_150, %c0_151, %c0_152, %c0_153], %166 {strides = array<i32>} : memref<1x1x3x8x128xf32, #tpu.memory_space<vmem>>, vector<1x1x3x8x128xf32>,
      %cst_154 = arith.constant 0.000000e+00 : f32
      %167 = vector.broadcast %cst_154 : f32 to vector<3x8x128xf32>
      %c0_155 = arith.constant 0 : index
      %c0_156 = arith.constant 0 : index
      %c0_157 = arith.constant 0 : index
      %c0_158 = arith.constant 0 : index
      %c0_159 = arith.constant 0 : index
      %168 = vector.load %arg8[%c0_155, %c0_156, %c0_157, %c0_158, %c0_159] : memref<1x1x3x8x128xf32, #tpu.memory_space<vmem>>, vector<1x1x3x8x128xf32>
      %169 = vector.shape_cast %168 : vector<1x1x3x8x128xf32> to vector<3x8x128xf32>
      %170 = vector.shape_cast %167 : vector<3x8x128xf32> to vector<1x1x3x8x128xf32>
      tpu.vector_store %arg8[%c0_155, %c0_156, %c0_157, %c0_158, %c0_159], %170 {strides = array<i32>} : memref<1x1x3x8x128xf32, #tpu.memory_space<vmem>>, vector<1x1x3x8x128xf32>,
    } else {
    }
    %c0 = arith.constant 0 : index
    %c0_1 = arith.constant 0 : index
    %c0_2 = arith.constant 0 : index
    %3 = vector.load %arg4[%c0, %c0_1, %c0_2] : memref<1x8x128xi32, #tpu.memory_space<vmem>>, vector<1x8x128xi32>
    %4 = vector.shape_cast %3 : vector<1x8x128xi32> to vector<8x128xi32>
    %c0_3 = arith.constant 0 : index
    %c0_4 = arith.constant 0 : index
    %c0_5 = arith.constant 0 : index
    %c0_6 = arith.constant 0 : index
    %5 = vector.load %arg3[%c0_3, %c0_4, %c0_5, %c0_6] : memref<1x3x8x128xf32, #tpu.memory_space<vmem>>, vector<1x1x8x128xf32>
    %6 = vector.shape_cast %5 : vector<1x1x8x128xf32> to vector<8x128xf32>
    %c0_7 = arith.constant 0 : index
    %c1 = arith.constant 1 : index
    %c0_8 = arith.constant 0 : index
    %c0_9 = arith.constant 0 : index
    %7 = vector.load %arg3[%c0_7, %c1, %c0_8, %c0_9] : memref<1x3x8x128xf32, #tpu.memory_space<vmem>>, vector<1x1x8x128xf32>
    %8 = vector.shape_cast %7 : vector<1x1x8x128xf32> to vector<8x128xf32>
    %c0_10 = arith.constant 0 : index
    %c2 = arith.constant 2 : index
    %c0_11 = arith.constant 0 : index
    %c0_12 = arith.constant 0 : index
    %9 = vector.load %arg3[%c0_10, %c2, %c0_11, %c0_12] : memref<1x3x8x128xf32, #tpu.memory_space<vmem>>, vector<1x1x8x128xf32>
    %10 = vector.shape_cast %9 : vector<1x1x8x128xf32> to vector<8x128xf32>
    %c1_i32 = arith.constant 1 : i32
    %11 = arith.muli %arg0, %c1_i32 : i32
    %12 = arith.addi %11, %arg2 : i32
    %13 = tpu.iota {dimensions = array<i32: 0>} : vector<8x128xi32>
    %c128_i32 = arith.constant 128 : i32
    %14 = vector.broadcast %c128_i32 : i32 to vector<8x128xi32>
    %15 = arith.muli %13, %14 : vector<8x128xi32>
    %16 = tpu.iota {dimensions = array<i32: 1>} : vector<8x128xi32>
    %17 = arith.addi %15, %16 : vector<8x128xi32>
    %c1024_i32 = arith.constant 1024 : i32
    %18 = arith.muli %12, %c1024_i32 : i32
    %c256_i32 = arith.constant 256 : i32
    %19 = arith.subi %c256_i32, %18 : i32
    %20 = vector.broadcast %19 : i32 to vector<8x128xi32>
    %21 = arith.cmpi slt, %17, %20 : vector<8x128xi32>
    %c3_i32 = arith.constant 3 : i32
    %22 = vector.broadcast %c3_i32 : i32 to vector<8x128xi32>
    %23 = arith.select %21, %4, %22 : vector<8x128xi1>, vector<8x128xi32>
    %24 = arith.maximumf %6, %8 : vector<8x128xf32>
    %25 = arith.maximumf %24, %10 : vector<8x128xf32>
    %26 = arith.subf %6, %25 : vector<8x128xf32>
    %27 = arith.subf %8, %25 : vector<8x128xf32>
    %28 = arith.subf %10, %25 : vector<8x128xf32>
    %29 = math.exp %26 : vector<8x128xf32>
    %30 = math.exp %27 : vector<8x128xf32>
    %31 = math.exp %28 : vector<8x128xf32>
    %32 = arith.addf %29, %30 : vector<8x128xf32>
    %33 = arith.addf %32, %31 : vector<8x128xf32>
    %34 = tpu.reciprocal %33 : vector<8x128xf32> -> vector<8x128xf32>
    %35 = math.log %33 : vector<8x128xf32>
    %c1_i32_13 = arith.constant 1 : i32
    %36 = vector.broadcast %c1_i32_13 : i32 to vector<8x128xi32>
    %37 = arith.cmpi eq, %23, %36 : vector<8x128xi32>
    %38 = arith.select %37, %27, %28 : vector<8x128xi1>, vector<8x128xf32>
    %c0_i32_14 = arith.constant 0 : i32
    %39 = vector.broadcast %c0_i32_14 : i32 to vector<8x128xi32>
    %40 = arith.cmpi eq, %23, %39 : vector<8x128xi32>
    %41 = arith.select %40, %26, %38 : vector<8x128xi1>, vector<8x128xf32>
    %42 = arith.subf %35, %41 : vector<8x128xf32>
    %cst = arith.constant 0.000000e+00 : f32
    %43 = vector.broadcast %cst : f32 to vector<8x128xf32>
    %44 = arith.select %21, %42, %43 : vector<8x128xi1>, vector<8x128xf32>
    %c0_15 = arith.constant 0 : index
    %c0_16 = arith.constant 0 : index
    %c0_17 = arith.constant 0 : index
    %c0_18 = arith.constant 0 : index
    %45 = vector.load %arg5[%c0_15, %c0_16, %c0_17, %c0_18] : memref<1x1x8x128xf32, #tpu.memory_space<vmem>>, vector<1x1x8x128xf32>
    %46 = vector.shape_cast %45 : vector<1x1x8x128xf32> to vector<8x128xf32>
    %47 = vector.shape_cast %44 : vector<8x128xf32> to vector<1x8x128xf32>
    %cst_19 = arith.constant dense<0.000000e+00> : vector<8x128xf32>
    %48 = vector.multi_reduction <add>, %47, %cst_19 [0] : vector<1x8x128xf32> to vector<8x128xf32>
    %49 = arith.addf %46, %48 : vector<8x128xf32>
    %c0_20 = arith.constant 0 : index
    %c0_21 = arith.constant 0 : index
    %c0_22 = arith.constant 0 : index
    %c0_23 = arith.constant 0 : index
    %50 = vector.load %arg5[%c0_20, %c0_21, %c0_22, %c0_23] : memref<1x1x8x128xf32, #tpu.memory_space<vmem>>, vector<1x1x8x128xf32>
    %51 = vector.shape_cast %50 : vector<1x1x8x128xf32> to vector<8x128xf32>
    %52 = vector.shape_cast %49 : vector<8x128xf32> to vector<1x1x8x128xf32>
    tpu.vector_store %arg5[%c0_20, %c0_21, %c0_22, %c0_23], %52 {strides = array<i32>} : memref<1x1x8x128xf32, #tpu.memory_space<vmem>>, vector<1x1x8x128xf32>,
    %53 = arith.mulf %29, %34 : vector<8x128xf32>
    %c0_i32_24 = arith.constant 0 : i32
    %54 = vector.broadcast %c0_i32_24 : i32 to vector<8x128xi32>
    %55 = arith.cmpi eq, %23, %54 : vector<8x128xi32>
    %c0_25 = arith.constant 0 : index
    %c0_26 = arith.constant 0 : index
    %c0_27 = arith.constant 0 : index
    %c0_28 = arith.constant 0 : index
    %c0_29 = arith.constant 0 : index
    %56 = vector.load %arg6[%c0_25, %c0_26, %c0_27, %c0_28, %c0_29] : memref<1x1x3x8x128xf32, #tpu.memory_space<vmem>>, vector<1x1x1x8x128xf32>
    %57 = vector.shape_cast %56 : vector<1x1x1x8x128xf32> to vector<8x128xf32>
    %cst_30 = arith.constant 0.000000e+00 : f32
    %58 = vector.broadcast %cst_30 : f32 to vector<8x128xf32>
    %59 = arith.select %55, %53, %58 : vector<8x128xi1>, vector<8x128xf32>
    %60 = vector.shape_cast %59 : vector<8x128xf32> to vector<1x8x128xf32>
    %cst_31 = arith.constant dense<0.000000e+00> : vector<8x128xf32>
    %61 = vector.multi_reduction <add>, %60, %cst_31 [0] : vector<1x8x128xf32> to vector<8x128xf32>
    %62 = arith.addf %57, %61 : vector<8x128xf32>
    %c0_32 = arith.constant 0 : index
    %c0_33 = arith.constant 0 : index
    %c0_34 = arith.constant 0 : index
    %c0_35 = arith.constant 0 : index
    %c0_36 = arith.constant 0 : index
    %63 = vector.load %arg6[%c0_32, %c0_33, %c0_34, %c0_35, %c0_36] : memref<1x1x3x8x128xf32, #tpu.memory_space<vmem>>, vector<1x1x1x8x128xf32>
    %64 = vector.shape_cast %63 : vector<1x1x1x8x128xf32> to vector<8x128xf32>
    %65 = vector.shape_cast %62 : vector<8x128xf32> to vector<1x1x1x8x128xf32>
    tpu.vector_store %arg6[%c0_32, %c0_33, %c0_34, %c0_35, %c0_36], %65 {strides = array<i32>} : memref<1x1x3x8x128xf32, #tpu.memory_space<vmem>>, vector<1x1x1x8x128xf32>,
    %c0_37 = arith.constant 0 : index
    %c0_38 = arith.constant 0 : index
    %c0_39 = arith.constant 0 : index
    %c0_40 = arith.constant 0 : index
    %c0_41 = arith.constant 0 : index
    %66 = vector.load %arg7[%c0_37, %c0_38, %c0_39, %c0_40, %c0_41] : memref<1x1x3x8x128xf32, #tpu.memory_space<vmem>>, vector<1x1x1x8x128xf32>
    %67 = vector.shape_cast %66 : vector<1x1x1x8x128xf32> to vector<8x128xf32>
    %cst_42 = arith.constant 0.000000e+00 : f32
    %68 = vector.broadcast %cst_42 : f32 to vector<8x128xf32>
    %69 = arith.select %21, %53, %68 : vector<8x128xi1>, vector<8x128xf32>
    %70 = vector.shape_cast %69 : vector<8x128xf32> to vector<1x8x128xf32>
    %cst_43 = arith.constant dense<0.000000e+00> : vector<8x128xf32>
    %71 = vector.multi_reduction <add>, %70, %cst_43 [0] : vector<1x8x128xf32> to vector<8x128xf32>
    %72 = arith.addf %67, %71 : vector<8x128xf32>
    %c0_44 = arith.constant 0 : index
    %c0_45 = arith.constant 0 : index
    %c0_46 = arith.constant 0 : index
    %c0_47 = arith.constant 0 : index
    %c0_48 = arith.constant 0 : index
    %73 = vector.load %arg7[%c0_44, %c0_45, %c0_46, %c0_47, %c0_48] : memref<1x1x3x8x128xf32, #tpu.memory_space<vmem>>, vector<1x1x1x8x128xf32>
    %74 = vector.shape_cast %73 : vector<1x1x1x8x128xf32> to vector<8x128xf32>
    %75 = vector.shape_cast %72 : vector<8x128xf32> to vector<1x1x1x8x128xf32>
    tpu.vector_store %arg7[%c0_44, %c0_45, %c0_46, %c0_47, %c0_48], %75 {strides = array<i32>} : memref<1x1x3x8x128xf32, #tpu.memory_space<vmem>>, vector<1x1x1x8x128xf32>,
    %c0_49 = arith.constant 0 : index
    %c0_50 = arith.constant 0 : index
    %c0_51 = arith.constant 0 : index
    %c0_52 = arith.constant 0 : index
    %c0_53 = arith.constant 0 : index
    %76 = vector.load %arg8[%c0_49, %c0_50, %c0_51, %c0_52, %c0_53] : memref<1x1x3x8x128xf32, #tpu.memory_space<vmem>>, vector<1x1x1x8x128xf32>
    %77 = vector.shape_cast %76 : vector<1x1x1x8x128xf32> to vector<8x128xf32>
    %cst_54 = arith.constant 1.000000e+00 : f32
    %cst_55 = arith.constant 0.000000e+00 : f32
    %78 = vector.broadcast %cst_54 : f32 to vector<8x128xf32>
    %79 = vector.broadcast %cst_55 : f32 to vector<8x128xf32>
    %80 = arith.select %55, %78, %79 : vector<8x128xi1>, vector<8x128xf32>
    %81 = vector.shape_cast %80 : vector<8x128xf32> to vector<1x8x128xf32>
    %cst_56 = arith.constant dense<0.000000e+00> : vector<8x128xf32>
    %82 = vector.multi_reduction <add>, %81, %cst_56 [0] : vector<1x8x128xf32> to vector<8x128xf32>
    %83 = arith.addf %77, %82 : vector<8x128xf32>
    %c0_57 = arith.constant 0 : index
    %c0_58 = arith.constant 0 : index
    %c0_59 = arith.constant 0 : index
    %c0_60 = arith.constant 0 : index
    %c0_61 = arith.constant 0 : index
    %84 = vector.load %arg8[%c0_57, %c0_58, %c0_59, %c0_60, %c0_61] : memref<1x1x3x8x128xf32, #tpu.memory_space<vmem>>, vector<1x1x1x8x128xf32>
    %85 = vector.shape_cast %84 : vector<1x1x1x8x128xf32> to vector<8x128xf32>
    %86 = vector.shape_cast %83 : vector<8x128xf32> to vector<1x1x1x8x128xf32>
    tpu.vector_store %arg8[%c0_57, %c0_58, %c0_59, %c0_60, %c0_61], %86 {strides = array<i32>} : memref<1x1x3x8x128xf32, #tpu.memory_space<vmem>>, vector<1x1x1x8x128xf32>,
    %87 = arith.mulf %30, %34 : vector<8x128xf32>
    %c1_i32_62 = arith.constant 1 : i32
    %88 = vector.broadcast %c1_i32_62 : i32 to vector<8x128xi32>
    %89 = arith.cmpi eq, %23, %88 : vector<8x128xi32>
    %c0_63 = arith.constant 0 : index
    %c0_64 = arith.constant 0 : index
    %c1_65 = arith.constant 1 : index
    %c0_66 = arith.constant 0 : index
    %c0_67 = arith.constant 0 : index
    %90 = vector.load %arg6[%c0_63, %c0_64, %c1_65, %c0_66, %c0_67] : memref<1x1x3x8x128xf32, #tpu.memory_space<vmem>>, vector<1x1x1x8x128xf32>
    %91 = vector.shape_cast %90 : vector<1x1x1x8x128xf32> to vector<8x128xf32>
    %cst_68 = arith.constant 0.000000e+00 : f32
    %92 = vector.broadcast %cst_68 : f32 to vector<8x128xf32>
    %93 = arith.select %89, %87, %92 : vector<8x128xi1>, vector<8x128xf32>
    %94 = vector.shape_cast %93 : vector<8x128xf32> to vector<1x8x128xf32>
    %cst_69 = arith.constant dense<0.000000e+00> : vector<8x128xf32>
    %95 = vector.multi_reduction <add>, %94, %cst_69 [0] : vector<1x8x128xf32> to vector<8x128xf32>
    %96 = arith.addf %91, %95 : vector<8x128xf32>
    %c0_70 = arith.constant 0 : index
    %c0_71 = arith.constant 0 : index
    %c1_72 = arith.constant 1 : index
    %c0_73 = arith.constant 0 : index
    %c0_74 = arith.constant 0 : index
    %97 = vector.load %arg6[%c0_70, %c0_71, %c1_72, %c0_73, %c0_74] : memref<1x1x3x8x128xf32, #tpu.memory_space<vmem>>, vector<1x1x1x8x128xf32>
    %98 = vector.shape_cast %97 : vector<1x1x1x8x128xf32> to vector<8x128xf32>
    %99 = vector.shape_cast %96 : vector<8x128xf32> to vector<1x1x1x8x128xf32>
    tpu.vector_store %arg6[%c0_70, %c0_71, %c1_72, %c0_73, %c0_74], %99 {strides = array<i32>} : memref<1x1x3x8x128xf32, #tpu.memory_space<vmem>>, vector<1x1x1x8x128xf32>,
    %c0_75 = arith.constant 0 : index
    %c0_76 = arith.constant 0 : index
    %c1_77 = arith.constant 1 : index
    %c0_78 = arith.constant 0 : index
    %c0_79 = arith.constant 0 : index
    %100 = vector.load %arg7[%c0_75, %c0_76, %c1_77, %c0_78, %c0_79] : memref<1x1x3x8x128xf32, #tpu.memory_space<vmem>>, vector<1x1x1x8x128xf32>
    %101 = vector.shape_cast %100 : vector<1x1x1x8x128xf32> to vector<8x128xf32>
    %cst_80 = arith.constant 0.000000e+00 : f32
    %102 = vector.broadcast %cst_80 : f32 to vector<8x128xf32>
    %103 = arith.select %21, %87, %102 : vector<8x128xi1>, vector<8x128xf32>
    %104 = vector.shape_cast %103 : vector<8x128xf32> to vector<1x8x128xf32>
    %cst_81 = arith.constant dense<0.000000e+00> : vector<8x128xf32>
    %105 = vector.multi_reduction <add>, %104, %cst_81 [0] : vector<1x8x128xf32> to vector<8x128xf32>
    %106 = arith.addf %101, %105 : vector<8x128xf32>
    %c0_82 = arith.constant 0 : index
    %c0_83 = arith.constant 0 : index
    %c1_84 = arith.constant 1 : index
    %c0_85 = arith.constant 0 : index
    %c0_86 = arith.constant 0 : index
    %107 = vector.load %arg7[%c0_82, %c0_83, %c1_84, %c0_85, %c0_86] : memref<1x1x3x8x128xf32, #tpu.memory_space<vmem>>, vector<1x1x1x8x128xf32>
    %108 = vector.shape_cast %107 : vector<1x1x1x8x128xf32> to vector<8x128xf32>
    %109 = vector.shape_cast %106 : vector<8x128xf32> to vector<1x1x1x8x128xf32>
    tpu.vector_store %arg7[%c0_82, %c0_83, %c1_84, %c0_85, %c0_86], %109 {strides = array<i32>} : memref<1x1x3x8x128xf32, #tpu.memory_space<vmem>>, vector<1x1x1x8x128xf32>,
    %c0_87 = arith.constant 0 : index
    %c0_88 = arith.constant 0 : index
    %c1_89 = arith.constant 1 : index
    %c0_90 = arith.constant 0 : index
    %c0_91 = arith.constant 0 : index
    %110 = vector.load %arg8[%c0_87, %c0_88, %c1_89, %c0_90, %c0_91] : memref<1x1x3x8x128xf32, #tpu.memory_space<vmem>>, vector<1x1x1x8x128xf32>
    %111 = vector.shape_cast %110 : vector<1x1x1x8x128xf32> to vector<8x128xf32>
    %cst_92 = arith.constant 1.000000e+00 : f32
    %cst_93 = arith.constant 0.000000e+00 : f32
    %112 = vector.broadcast %cst_92 : f32 to vector<8x128xf32>
    %113 = vector.broadcast %cst_93 : f32 to vector<8x128xf32>
    %114 = arith.select %89, %112, %113 : vector<8x128xi1>, vector<8x128xf32>
    %115 = vector.shape_cast %114 : vector<8x128xf32> to vector<1x8x128xf32>
    %cst_94 = arith.constant dense<0.000000e+00> : vector<8x128xf32>
    %116 = vector.multi_reduction <add>, %115, %cst_94 [0] : vector<1x8x128xf32> to vector<8x128xf32>
    %117 = arith.addf %111, %116 : vector<8x128xf32>
    %c0_95 = arith.constant 0 : index
    %c0_96 = arith.constant 0 : index
    %c1_97 = arith.constant 1 : index
    %c0_98 = arith.constant 0 : index
    %c0_99 = arith.constant 0 : index
    %118 = vector.load %arg8[%c0_95, %c0_96, %c1_97, %c0_98, %c0_99] : memref<1x1x3x8x128xf32, #tpu.memory_space<vmem>>, vector<1x1x1x8x128xf32>
    %119 = vector.shape_cast %118 : vector<1x1x1x8x128xf32> to vector<8x128xf32>
    %120 = vector.shape_cast %117 : vector<8x128xf32> to vector<1x1x1x8x128xf32>
    tpu.vector_store %arg8[%c0_95, %c0_96, %c1_97, %c0_98, %c0_99], %120 {strides = array<i32>} : memref<1x1x3x8x128xf32, #tpu.memory_space<vmem>>, vector<1x1x1x8x128xf32>,
    %121 = arith.mulf %31, %34 : vector<8x128xf32>
    %c2_i32 = arith.constant 2 : i32
    %122 = vector.broadcast %c2_i32 : i32 to vector<8x128xi32>
    %123 = arith.cmpi eq, %23, %122 : vector<8x128xi32>
    %c0_100 = arith.constant 0 : index
    %c0_101 = arith.constant 0 : index
    %c2_102 = arith.constant 2 : index
    %c0_103 = arith.constant 0 : index
    %c0_104 = arith.constant 0 : index
    %124 = vector.load %arg6[%c0_100, %c0_101, %c2_102, %c0_103, %c0_104] : memref<1x1x3x8x128xf32, #tpu.memory_space<vmem>>, vector<1x1x1x8x128xf32>
    %125 = vector.shape_cast %124 : vector<1x1x1x8x128xf32> to vector<8x128xf32>
    %cst_105 = arith.constant 0.000000e+00 : f32
    %126 = vector.broadcast %cst_105 : f32 to vector<8x128xf32>
    %127 = arith.select %123, %121, %126 : vector<8x128xi1>, vector<8x128xf32>
    %128 = vector.shape_cast %127 : vector<8x128xf32> to vector<1x8x128xf32>
    %cst_106 = arith.constant dense<0.000000e+00> : vector<8x128xf32>
    %129 = vector.multi_reduction <add>, %128, %cst_106 [0] : vector<1x8x128xf32> to vector<8x128xf32>
    %130 = arith.addf %125, %129 : vector<8x128xf32>
    %c0_107 = arith.constant 0 : index
    %c0_108 = arith.constant 0 : index
    %c2_109 = arith.constant 2 : index
    %c0_110 = arith.constant 0 : index
    %c0_111 = arith.constant 0 : index
    %131 = vector.load %arg6[%c0_107, %c0_108, %c2_109, %c0_110, %c0_111] : memref<1x1x3x8x128xf32, #tpu.memory_space<vmem>>, vector<1x1x1x8x128xf32>
    %132 = vector.shape_cast %131 : vector<1x1x1x8x128xf32> to vector<8x128xf32>
    %133 = vector.shape_cast %130 : vector<8x128xf32> to vector<1x1x1x8x128xf32>
    tpu.vector_store %arg6[%c0_107, %c0_108, %c2_109, %c0_110, %c0_111], %133 {strides = array<i32>} : memref<1x1x3x8x128xf32, #tpu.memory_space<vmem>>, vector<1x1x1x8x128xf32>,
    %c0_112 = arith.constant 0 : index
    %c0_113 = arith.constant 0 : index
    %c2_114 = arith.constant 2 : index
    %c0_115 = arith.constant 0 : index
    %c0_116 = arith.constant 0 : index
    %134 = vector.load %arg7[%c0_112, %c0_113, %c2_114, %c0_115, %c0_116] : memref<1x1x3x8x128xf32, #tpu.memory_space<vmem>>, vector<1x1x1x8x128xf32>
    %135 = vector.shape_cast %134 : vector<1x1x1x8x128xf32> to vector<8x128xf32>
    %cst_117 = arith.constant 0.000000e+00 : f32
    %136 = vector.broadcast %cst_117 : f32 to vector<8x128xf32>
    %137 = arith.select %21, %121, %136 : vector<8x128xi1>, vector<8x128xf32>
    %138 = vector.shape_cast %137 : vector<8x128xf32> to vector<1x8x128xf32>
    %cst_118 = arith.constant dense<0.000000e+00> : vector<8x128xf32>
    %139 = vector.multi_reduction <add>, %138, %cst_118 [0] : vector<1x8x128xf32> to vector<8x128xf32>
    %140 = arith.addf %135, %139 : vector<8x128xf32>
    %c0_119 = arith.constant 0 : index
    %c0_120 = arith.constant 0 : index
    %c2_121 = arith.constant 2 : index
    %c0_122 = arith.constant 0 : index
    %c0_123 = arith.constant 0 : index
    %141 = vector.load %arg7[%c0_119, %c0_120, %c2_121, %c0_122, %c0_123] : memref<1x1x3x8x128xf32, #tpu.memory_space<vmem>>, vector<1x1x1x8x128xf32>
    %142 = vector.shape_cast %141 : vector<1x1x1x8x128xf32> to vector<8x128xf32>
    %143 = vector.shape_cast %140 : vector<8x128xf32> to vector<1x1x1x8x128xf32>
    tpu.vector_store %arg7[%c0_119, %c0_120, %c2_121, %c0_122, %c0_123], %143 {strides = array<i32>} : memref<1x1x3x8x128xf32, #tpu.memory_space<vmem>>, vector<1x1x1x8x128xf32>,
    %c0_124 = arith.constant 0 : index
    %c0_125 = arith.constant 0 : index
    %c2_126 = arith.constant 2 : index
    %c0_127 = arith.constant 0 : index
    %c0_128 = arith.constant 0 : index
    %144 = vector.load %arg8[%c0_124, %c0_125, %c2_126, %c0_127, %c0_128] : memref<1x1x3x8x128xf32, #tpu.memory_space<vmem>>, vector<1x1x1x8x128xf32>
    %145 = vector.shape_cast %144 : vector<1x1x1x8x128xf32> to vector<8x128xf32>
    %cst_129 = arith.constant 1.000000e+00 : f32
    %cst_130 = arith.constant 0.000000e+00 : f32
    %146 = vector.broadcast %cst_129 : f32 to vector<8x128xf32>
    %147 = vector.broadcast %cst_130 : f32 to vector<8x128xf32>
    %148 = arith.select %123, %146, %147 : vector<8x128xi1>, vector<8x128xf32>
    %149 = vector.shape_cast %148 : vector<8x128xf32> to vector<1x8x128xf32>
    %cst_131 = arith.constant dense<0.000000e+00> : vector<8x128xf32>
    %150 = vector.multi_reduction <add>, %149, %cst_131 [0] : vector<1x8x128xf32> to vector<8x128xf32>
    %151 = arith.addf %145, %150 : vector<8x128xf32>
    %c0_132 = arith.constant 0 : index
    %c0_133 = arith.constant 0 : index
    %c2_134 = arith.constant 2 : index
    %c0_135 = arith.constant 0 : index
    %c0_136 = arith.constant 0 : index
    %152 = vector.load %arg8[%c0_132, %c0_133, %c2_134, %c0_135, %c0_136] : memref<1x1x3x8x128xf32, #tpu.memory_space<vmem>>, vector<1x1x1x8x128xf32>
    %153 = vector.shape_cast %152 : vector<1x1x1x8x128xf32> to vector<8x128xf32>
    %154 = vector.shape_cast %151 : vector<8x128xf32> to vector<1x1x1x8x128xf32>
    tpu.vector_store %arg8[%c0_132, %c0_133, %c2_134, %c0_135, %c0_136], %154 {strides = array<i32>} : memref<1x1x3x8x128xf32, #tpu.memory_space<vmem>>, vector<1x1x1x8x128xf32>,
    return
  }
  func.func @transform_0(%arg0: i32, %arg1: i32, %arg2: i32) -> (i32, i32, i32, i32) {
    %c1_i32 = arith.constant 1 : i32
    %0 = arith.muli %arg0, %c1_i32 : i32
    %1 = arith.addi %0, %arg2 : i32
    %c0_i32 = arith.constant 0 : i32
    %c0_i32_0 = arith.constant 0 : i32
    %c0_i32_1 = arith.constant 0 : i32
    return %arg1, %c0_i32, %1, %c0_i32_0 : i32, i32, i32, i32
  }
  func.func @transform_1(%arg0: i32, %arg1: i32, %arg2: i32) -> (i32, i32, i32) {
    %c1_i32 = arith.constant 1 : i32
    %0 = arith.muli %arg0, %c1_i32 : i32
    %1 = arith.addi %0, %arg2 : i32
    %c0_i32 = arith.constant 0 : i32
    %c0_i32_0 = arith.constant 0 : i32
    return %arg1, %1, %c0_i32 : i32, i32, i32
  }
  func.func @transform_2(%arg0: i32, %arg1: i32, %arg2: i32) -> (i32, i32, i32, i32) {
    %c0_i32 = arith.constant 0 : i32
    %c0_i32_0 = arith.constant 0 : i32
    %c0_i32_1 = arith.constant 0 : i32
    return %arg0, %arg1, %c0_i32, %c0_i32_0 : i32, i32, i32, i32
  }
  func.func @transform_3(%arg0: i32, %arg1: i32, %arg2: i32) -> (i32, i32, i32, i32, i32) {
    %c0_i32 = arith.constant 0 : i32
    %c0_i32_0 = arith.constant 0 : i32
    %c0_i32_1 = arith.constant 0 : i32
    %c0_i32_2 = arith.constant 0 : i32
    return %arg0, %arg1, %c0_i32, %c0_i32_0, %c0_i32_1 : i32, i32, i32, i32, i32
  }
  func.func @transform_4(%arg0: i32, %arg1: i32, %arg2: i32) -> (i32, i32, i32, i32, i32) {
    %c0_i32 = arith.constant 0 : i32
    %c0_i32_0 = arith.constant 0 : i32
    %c0_i32_1 = arith.constant 0 : i32
    %c0_i32_2 = arith.constant 0 : i32
    return %arg0, %arg1, %c0_i32, %c0_i32_0, %c0_i32_1 : i32, i32, i32, i32, i32
  }
  func.func @transform_5(%arg0: i32, %arg1: i32, %arg2: i32) -> (i32, i32, i32, i32, i32) {
    %c0_i32 = arith.constant 0 : i32
    %c0_i32_0 = arith.constant 0 : i32
    %c0_i32_1 = arith.constant 0 : i32
    %c0_i32_2 = arith.constant 0 : i32
    return %arg0, %arg1, %c0_i32, %c0_i32_0, %c0_i32_1 : i32, i32, i32, i32, i32
  }
}

</mosaic_0001>

<bundles_post_ra>
// kernel: tpu_custom_call.1
= control target key start
LH: loop header
LB: loop body
LE: loop exit
PB: predicated region body
PF: predicated region fallthrough
CT: control target
= control target key end

     0   :  { %s1561_s0 = inlined_call_operand.hbm [shape: f32[2,3,8,128], index: 0, kind: input, shape index: {}]   ;;  %s1562_s1 = inlined_call_operand.hbm [shape: s32[2,8,128], index: 1, kind: input, shape index: {}]   ;;  %s1563_s2 = inlined_call_operand.hbm [shape: f32[1,2,8,128], index: 2, kind: output, shape index: {0}]   ;;  %s1564_s3 = inlined_call_operand.hbm [shape: f32[1,2,3,8,128], index: 3, kind: output, shape index: {1}]   ;;  %s1565_s4 = inlined_call_operand.hbm [shape: f32[1,2,3,8,128], index: 4, kind: output, shape index: {2}]   ;;  %s1566_s5 = inlined_call_operand.hbm [shape: f32[1,2,3,8,128], index: 5, kind: output, shape index: {3}]  }
   0x1   :  { %1575 = sst [smem:[#allocation19_spill]] %s1561_s0 }
   0x2   :  { %1576 = sst [smem:[#allocation20_spill]] %s1562_s1 }
   0x3   :  { %11 = vsyncpa [#allocation3], 0 }
   0x4   :  { %13 = vsyncpa [#allocation3 + $0x1], 0 }
   0x5   :  { %14 = vsyncpa [#allocation6], 0 }
   0x6   :  { %16 = vsyncpa [#allocation6 + $0x1], 0 }
   0x7   :  { %17 = vsyncpa [#allocation4], 0 }
   0x8   :  { %19 = vsyncpa [#allocation4 + $0x1], 0 }
   0x9   :  { %20 = vsyncpa [#allocation9], 0 }
   0xa   :  { %22 = vsyncpa [#allocation9 + $0x1], 0 }
   0xb   :  { %23 = vsyncpa [#allocation12], 0 }
   0xc   :  { %25 = vsyncpa [#allocation12 + $0x1], 0  ;;  %s1175_s18 = smov 0   ;;  %s1177_s19 = smov 0  }
   0xd   :  { %s1179_s20 = smov 0   ;;  %s1181_s21 = smov 0  }
   0xe   :  { %s1183_s22 = smov 0   ;;  %s1185_s23 = smov 0  }
   0xf LB: > { %s1206_s24 = sadd.s32 4294967295, %s1132_s23   ;;  %s1567_s25 = sadd.s32 4294967294, %s1132_s23   ;;  %s1132_s23 = sphi %s1185_s23, %s31_s23   ;;  %s1128_s22 = sphi %s1183_s22, %s1600_s22   ;;  %s1124_s21 = sphi %s1181_s21, %s1599_s21   ;;  %s1120_s20 = sphi %s1179_s20, %s1598_s20   ;;  %s1116_s19 = sphi %s1177_s19, %s1597_s19   ;;  %s1112_s18 = sphi %s1175_s18, %s1596_s18  }
  0x10   : > { %s46_s26 = sadd.s32 1, %s1128_s22  ;;  %s61_s27 = sadd.s32 1, %s1120_s20 }
  0x11   : > { %p48_p0 = scmp.ge.s32.totalorder %s46_s26, 2  ;;  %p68_p1 = scmp.ne.s32.totalorder %s1120_s20, %s1116_s19 }
  0x12   : > { %p69_p2 = scmp.eq.s32.totalorder %s1132_s23, 0  ;;  %p74_p3 = scmp.ne.s32.totalorder %s1116_s19, %s1112_s18 }
  0x13   : > { %s1602_s26 = smov (%p48_p0, %s46_s26), 0  ;;  %p75_p5 = scmp.eq.s32.totalorder %s1206_s24, 0 }
  0x14   : > { %1577 = sst [smem:[#allocation18_spill]] %s1602_s26  ;;  %p1218_p4 = por %p69_p2, %p68_p1 }
  0x15   : > { %s56_s29 = ssub.s32 %s1128_s22, %s1602_s26  ;;  %p130_p6 = scmp.eq.s32.totalorder %s1206_s24, 1 }
  0x16   : > { %p59_p7 = scmp.eq.s32.totalorder %s56_s29, 0  ;;  %p1226_p8 = por %p75_p5, %p74_p3 }
  0x17   : > { %p1230_p9 = por %p130_p6, %p68_p1  ;;  %p136_p10 = scmp.eq.s32.totalorder %s1567_s25, 1 }
  0x18   : > { %s1579_s30 = scalar_select %p1226_p8, 1, 0 }
  0x19   : > { %s1580_s6 = scalar_select %p1230_p9, 1, 0 }
  0x1a   : > { %s1237_s7 = scalar_select %p59_p7, %s1120_s20, %s61_s27  }
  0x1b   : > { %p1239_p11 = por %p136_p10, %p74_p3  ;;  %p829_p13 = scmp.lt.s32.totalorder %s1132_s23, 2 }
  0x1c   : > { %s1246_s9 = sand.u32 1, %s1120_s20   ;;  %s792_s11 = smul.u32 384, %s1128_s22 }
  0x1d   : > { %s1581_s8 = scalar_select %p1239_p11, 1, 0 }
  0x1e   : > { %s791_s10 = smul.u32 24, %s1246_s9  ;;  %p1252_p0 = pnand %p829_p13, %p1218_p4 }
  0x1f   : > { %s1583_s0 = sld [smem:[#allocation19_spill]]  ;;  %s241_s27 = scalar_lea.sflag [#allocation3], %s1246_s9 }
  0x20   : > { %s244_s16 = scalar_lea.vmem [#allocation2], %s791_s10  ;;  %p896_p3 = pneg %p1252_p0 }
  0x21   : > { %s253_s17 = sshll.u32 %s244_s16, 4  ;;  %s1261_s17 = int_to_ptr.vmem [resolvable:$true] %s253_s17 }
  0x25   : > { %s1259_s15 = scalar_lea.hbm %s1583_s0, %s792_s11  ;;  %s899_s13 = scalar_lea.hbm %s1583_s0, 768 }
  0x26   : > { %s894_s28 = scalar_lea.hbm %s1259_s15, 384  ;;  %p900_p6 = scmp.lt.u32.totalorder %s1259_s15, %s1583_s0 }
  0x27   : > { %p895_p2 = scmp.ne.s32.totalorder %s1259_s15, %s894_s28  ;;  %p901_p7 = scmp.lt.u32.totalorder %s899_s13, %s894_s28 }
  0x28   : > { %p903_p13 = scmp.lt.u32.totalorder %s894_s28, %s1259_s15 }
  0x29   : > { %p897_p4 = pnand %p896_p3, %p895_p2  ;;  %p902_p10 = por %p901_p7, %p900_p6 }
  0x2b   : > { %p898_p5 = pneg %p897_p4  ;;  %p904_p12 = por %p903_p13, %p902_p10 }
  0x2d   : > { %p905_p1 = pnand %p904_p12, %p898_p5 }
  0x2f   : > { %908 = shalt.err (!%p905_p1)
}
  0x30   : > { %s909_s10 = scalar_lea.vmem %s1261_s17, 384  ;;  %s1134_s16 = smov [#allocation2]  }
  0x31   : > { %p910_p2 = scmp.ne.s32.totalorder %s1261_s17, %s909_s10  ;;  %s914_s29 = sshll.u32 %s1134_s16, 4  ;;  %s915_s29 = int_to_ptr.vmem [resolvable:$false] %s914_s29 }
  0x32   : > { %s916_s25 = scalar_lea.vmem %s915_s29, 768  ;;  %p917_p9 = scmp.lt.s32.totalorder %s1261_s17, %s915_s29 }
  0x33   : > { %p912_p4 = pnand %p910_p2, %p896_p3  ;;  %p918_p6 = scmp.lt.s32.totalorder %s916_s25, %s909_s10 }
  0x35   : > { %p913_p11 = pneg %p912_p4  ;;  %p919_p7 = por %p918_p6, %p917_p9 }
  0x37   : > { %p920_p10 = pnand %p919_p7, %p913_p11 }
  0x39   : > { %923 = shalt.err (!%p920_p10)
}
  0x3a   : > { %s1135_s28 = smov 128   ;;  %s1136_s11 = smov 8  }
  0x3b   : > { %812 = dma.hbm_to_vmem [thread:$0]  (!%p1252_p0), %s1259_s15, 384, %s1261_s17, %s241_s27, %s1135_s28, %s1135_s28, %s1136_s11  }
  0x3c   : > { %p281_p12 = scmp.lt.s32.totalorder %s1132_s23, 3  ;;  %s765_s13 = sshll.u32 %s1246_s9, 3 }
  0x3d   : > { %s766_s14 = sshll.u32 %s1128_s22, 7  ;;  %p1584_p9 = scmp.ge.s32.totalorder %s1132_s23, 1 }
  0x3e   : > { %s1586_s1 = sld [smem:[#allocation20_spill]]  ;;  %s267_s0 = scalar_lea.vmem [#allocation5], %s765_s13 }
  0x3f   : > { %p1297_p11 = pnand %p1584_p9, %p281_p12  ;;  %s276_s26 = sshll.u32 %s267_s0, 4  ;;  %s277_s26 = int_to_ptr.vmem [resolvable:$true] %s276_s26 }
  0x40   : > { %s264_s15 = scalar_lea.sflag [#allocation6], %s1246_s9 }
  0x41   : > { %s1585_s10 = scalar_select %p1297_p11, 1, 0 }
  0x44   : > { %s1304_s25 = scalar_lea.hbm %s1586_s1, %s766_s14  ;;  %s929_s11 = scalar_lea.hbm %s1586_s1, 256 }
  0x45   : > { %s924_s17 = scalar_lea.hbm %s1304_s25, 128  ;;  %p930_p2 = scmp.lt.u32.totalorder %s1304_s25, %s1586_s1 }
  0x46   : > { %p925_p1 = scmp.ne.s32.totalorder %s1304_s25, %s924_s17  ;;  %p931_p4 = scmp.lt.u32.totalorder %s929_s11, %s924_s17 }
  0x47   : > { %p933_p7 = scmp.lt.u32.totalorder %s924_s17, %s1304_s25 }
  0x48   : > { %p927_p5 = pnand %p925_p1, %p896_p3  ;;  %p932_p6 = por %p931_p4, %p930_p2 }
  0x4a   : > { %p928_p13 = pneg %p927_p5  ;;  %p934_p10 = por %p933_p7, %p932_p6 }
  0x4c   : > { %p935_p12 = pnand %p934_p10, %p928_p13 }
  0x4e   : > { %938 = shalt.err (!%p935_p12)
}
  0x4f   : > { %s939_s0 = scalar_lea.vmem %s277_s26, 128  ;;  %s1137_s9 = smov [#allocation5]  }
  0x50   : > { %p940_p9 = scmp.ne.s32.totalorder %s277_s26, %s939_s0  ;;  %s944_s13 = sshll.u32 %s1137_s9, 4  ;;  %s945_s13 = int_to_ptr.vmem [resolvable:$false] %s944_s13 }
  0x51   : > { %s946_s29 = scalar_lea.vmem %s945_s13, 256  ;;  %p947_p8 = scmp.lt.s32.totalorder %s277_s26, %s945_s13 }
  0x52   : > { %p942_p1 = pnand %p940_p9, %p896_p3  ;;  %p948_p11 = scmp.lt.s32.totalorder %s946_s29, %s939_s0 }
  0x54   : > { %p943_p5 = pneg %p942_p1  ;;  %p949_p2 = por %p948_p11, %p947_p8 }
  0x56   : > { %p950_p4 = pnand %p949_p2, %p943_p5 }
  0x58   : > { %953 = shalt.err (!%p950_p4)
}
  0x59   : > { %815 = dma.hbm_to_vmem [thread:$0]  (!%p1252_p0), %s1304_s25, 128, %s277_s26, %s264_s15  }
  0x5a   : > { %p1587_p13 = scmp.ne.s32.totalorder %s1585_s10, 0 }
  0x5b   : > { %s1329_s17 = sand.u32 (!%p1587_p13), 1, %s1116_s19   ;;  %p1588_p8 = scmp.ne.s32.totalorder (!%p1587_p13), %s1579_s30, 0 }
  0x5c   : > { %285 = sbr.rel (%p1587_p13) target bundleno = 227 (0xe3), region = 28  ;;  %s288_s28 = scalar_lea.sflag (!%p1587_p13), [#allocation3], %s1329_s17 }
  0x5d   : > { %s1332_s27 = smul.u32 (!%p1587_p13), 24, %s1329_s17 }
  0x5f   : > { %s291_s11 = scalar_lea.vmem (!%p1587_p13), [#allocation2], %s1332_s27 }
  0x63   : > { %1091 = dma.done.wait (%p1588_p8), %s288_s28, 384  }
  0x64   : > { %1093 = vsyncadd (%p1588_p8), %s288_s28, 4294966912  ;;  %s768_s26 = sshll.u32 %s1329_s17, 3  ;;  %s297_s12 = scalar_lea.sflag [#allocation6], %s1329_s17 }
  0x65   : > { %s300_s10 = scalar_lea.vmem [#allocation5], %s768_s26 }
  0x66   : > { %1095 = dma.done.wait (%p1588_p8), %s297_s12, 128  }
  0x67   : > { %1097 = vsyncadd (%p1588_p8), %s297_s12, 4294967168  ;;  %v370_v0 = vlaneseq  ;;  %v363_v5 = vld [vmem:[%s300_s10] sm:$0xff]  ;;  %v770_v7 = vld [vmem:[%s291_s11 + $0x8] sm:$0xff]  ;;  %s1356_s30 = smul.u32 384, %s1124_s21  ;;  %v1138_v12 = vmov 0.0   ;;  %s346_s25 = scalar_lea.vmem [#allocation11], %s1332_s27 }
  0x68   : > { %v364_v6 = vld [vmem:[%s291_s11] sm:$0xff]  ;;  %v771_v8 = vld [vmem:[%s291_s11 + $0x10] sm:$0xff]  ;;  %s544_s15 = sshll.u32 %s346_s25, 4  ;;  %s478_s9 = scalar_lea.sflag [#allocation12], %s1329_s17  ;;  %s1374_s15 = int_to_ptr.vmem [resolvable:$true] %s544_s15 }
  0x69   : > { %v371_v1 = vshrl.u32 %v370_v0, 7  ;;  %v374_v2 = vand.u32 127, %v370_v0  ;;  %v381_v9 = vmax.f32 %v364_v6, %v770_v7  ;;  %s1372_s0 = scalar_lea.hbm %s1566_s5, %s1356_s30  ;;  %s954_s13 = scalar_lea.vmem %s1374_s15, 384 }
  0x6a   : > { %p955_p0 = scmp.ne.s32.totalorder %s1374_s15, %s954_s13  ;;  %p1589_p3 = scmp.ne.s32.totalorder %s1580_s6, 0 }
  0x6b   : > { %v372_v3 = vmul.u32 128, %v371_v1  ;;  %v382_v11 = vmax.f32 %v381_v9, %v771_v8  ;;  %s1139_s29 = smov [#allocation11]  }
  0x6c   : > { %p956_p11 = pnand %p955_p0, %p1589_p3  ;;  %s958_s28 = sshll.u32 %s1139_s29, 4  ;;  %s959_s28 = int_to_ptr.vmem [resolvable:$false] %s958_s28 }
  0x6d   : > { %v1348_v4 = vadd.s32 %v374_v2, %v372_v3  ;;  %v383_v16 = vsub.f32 %v364_v6, %v382_v11  ;;  %v384_v17 = vsub.f32 %v770_v7, %v382_v11  ;;  %v385_v18 = vsub.f32 %v771_v8, %v382_v11  ;;  %s960_s11 = scalar_lea.vmem %s959_s28, 768  ;;  %p961_p7 = scmp.lt.s32.totalorder %s1374_s15, %s959_s28 }
  0x6e   : > { %p957_p6 = pneg %p956_p11  ;;  %p962_p10 = scmp.lt.s32.totalorder %s960_s11, %s954_s13 }
  0x6f   : > { %vm379_vm0 = vcmp.lt.s32.totalorder %v1348_v4, 256  ;;  %v386_v19 = vmul.f32 1.442695, %v383_v16  ;;  %v388_v20 = vmul.f32 1.442695, %v384_v17 }
  0x70   : > { %v1353_v10 = vsel %vm379_vm0, %v363_v5, 3  ;;  %v390_v21 = vmul.f32 1.442695, %v385_v18  ;;  %p963_p12 = por %p962_p10, %p961_p7 }
  0x71   : > { %vm399_vm1 = vcmp.eq.s32.totalorder %v1353_v10, 0  ;;  %vm397_vm2 = vcmp.eq.s32.totalorder %v1353_v10, 1  ;;  %vm443_vm3 = vcmp.eq.s32.totalorder %v1353_v10, 2  ;;  %884 = vpow2.f32 %v386_v19 }
  0x72   : > { %v419_v13 = vsel %vm399_vm1, 1.0, %v1138_v12  ;;  %v438_v14 = vsel %vm397_vm2, 1.0, %v1138_v12  ;;  %v458_v15 = vsel %vm443_vm3, 1.0, %v1138_v12  ;;  %p964_p9 = pnand %p963_p12, %p957_p6 }
  0x73   : > { %422 = vst [vmem:[%s346_s25] sm:$0xff] %v419_v13  ;;  %777 = vst [vmem:[%s346_s25 + $0x8] sm:$0xff] %v438_v14 }
  0x74   : > { %783 = vst [vmem:[%s346_s25 + $0x10] sm:$0xff] %v458_v15 }
  0x75   : > { %967 = shalt.err (!%p964_p9)
}
  0x76   : > { %s968_s12 = scalar_lea.hbm %s1372_s0, 384  ;;  %s972_s14 = scalar_lea.hbm %s1566_s5, 768 }
  0x77   : > { %p969_p1 = scmp.ne.s32.totalorder %s1372_s0, %s968_s12  ;;  %p973_p4 = scmp.lt.u32.totalorder %s1372_s0, %s1566_s5 }
  0x78   : > { %p974_p13 = scmp.lt.u32.totalorder %s972_s14, %s968_s12  ;;  %p976_p0 = scmp.lt.u32.totalorder %s968_s12, %s1372_s0 }
  0x79   : > { %p970_p5 = pnand %p969_p1, %p1589_p3 }
  0x7a   : > { %p975_p8 = por %p974_p13, %p973_p4 }
  0x7b   : > { %p971_p2 = pneg %p970_p5 }
  0x7c   : > { %p977_p11 = por %p976_p0, %p975_p8 }
  0x7e   : > { %p978_p6 = pnand %p977_p11, %p971_p2 }
  0x80   : > { %981 = shalt.err (!%p978_p6)
}
  0x81   : > { %s1571_s13 = smov 128   ;;  %s1573_s28 = smov 8   ;;  %886 = vpow2.f32 %v388_v20  ;;  %v885_v22 = vpop.eup %884  ;;  %v398_v27 = vsel %vm397_vm2, %v384_v17, %v385_v18 }
  0x82   : > { %804 = dma.vmem_to_hbm [thread:$0]  (%p1589_p3), %s1374_s15, 384, %s1372_s0, %s478_s9, %s1571_s13, %s1571_s13, %s1573_s28   ;;  %888 = vpow2.f32 %v390_v21  ;;  %v400_v33 = vsel %vm399_vm1, %v383_v16, %v398_v27 }
  0x83   : > { %s467_s11 = sand.u32 1, %s1206_s24   ;;  %s332_s15 = scalar_lea.vmem [#allocation8], %s1332_s27 }
  0x84   : > { %s508_s0 = sshll.u32 %s332_s15, 4  ;;  %s785_s9 = sshll.u32 %s1124_s21, 7  ;;  %s1433_s0 = int_to_ptr.vmem [resolvable:$true] %s508_s0 }
  0x85   : > { %s1412_s12 = scalar_lea.vmem [#allocation7], %s768_s26  ;;  %s1427_s26 = scalar_lea.hbm %s1564_s3, %s1356_s30 }
  0x86   : > { %s493_s10 = sshll.u32 %s1412_s12, 4  ;;  %s1430_s14 = scalar_lea.vmem [#allocation10], %s1332_s27  ;;  %s1444_s10 = int_to_ptr.vmem [resolvable:$true] %s493_s10 }
  0x87   : > { %s526_s16 = sshll.u32 %s1430_s14, 4  ;;  %s1442_s27 = scalar_lea.hbm %s1563_s2, %s785_s9  ;;  %s1454_s16 = int_to_ptr.vmem [resolvable:$true] %s526_s16 }
  0x88   : > { %s1452_s28 = scalar_lea.hbm %s1565_s4, %s1356_s30  ;;  %s1459_s9 = scalar_lea.sflag [#allocation9], %s467_s11 }
  0x89   : > { %s982_s29 = scalar_lea.vmem %s1433_s0, 384 }
  0x8a   : > { %p983_p7 = scmp.ne.s32.totalorder %s1433_s0, %s982_s29 }
  0x8b   : > { %v887_v23 = vpop.eup %886 }
  0x8c   : > { %v889_v24 = vpop.eup %888  ;;  %v392_v25 = vadd.f32 %v887_v23, %v885_v22  ;;  %p984_p10 = pnand %p983_p7, %p1589_p3 }
  0x8e   : > { %v393_v26 = vadd.f32 %v889_v24, %v392_v25  ;;  %p985_p12 = pneg %p984_p10 }
  0x90   : > { %890 = vrcp.f32 %v393_v26 }
  0x91   : > { %892 = vlog2.f32 %v393_v26 }
  0x9a   : > { %v891_v28 = vpop.eup %890 }
  0x9b   : > { %v893_v29 = vpop.eup %892  ;;  %v407_v30 = vmul.f32 %v891_v28, %v885_v22  ;;  %v423_v31 = vmul.f32 %v891_v28, %v887_v23  ;;  %v442_v32 = vmul.f32 %v891_v28, %v889_v24 }
  0x9c   : > { %v396_v34 = vmul.f32 0.6931472, %v893_v29 }
  0x9d   : > { %v409_v35 = vsel %vm399_vm1, %v407_v30, 0.0  ;;  %v426_v36 = vsel %vm397_vm2, %v423_v31, 0.0  ;;  %v446_v37 = vsel %vm443_vm3, %v442_v32, 0.0  ;;  %v414_v38 = vsel %vm379_vm0, %v407_v30, 0.0 }
  0x9e   : > { %v401_v39 = vsub.f32 %v396_v34, %v400_v33  ;;  %v432_v40 = vsel %vm379_vm0, %v423_v31, 0.0  ;;  %v452_v41 = vsel %vm379_vm0, %v442_v32, 0.0  ;;  %412 = vst [vmem:[%s332_s15] sm:$0xff] %v409_v35  ;;  %773 = vst [vmem:[%s332_s15 + $0x8] sm:$0xff] %v426_v36 }
  0x9f   : > { %779 = vst [vmem:[%s332_s15 + $0x10] sm:$0xff] %v446_v37  ;;  %417 = vst [vmem:[%s1430_s14] sm:$0xff] %v414_v38  ;;  %s1142_s15 = smov [#allocation8]  }
  0xa0   : > { %v402_v42 = vsel %vm379_vm0, %v401_v39, 0.0  ;;  %s986_s25 = sshll.u32 %s1142_s15, 4  ;;  %s987_s25 = int_to_ptr.vmem [resolvable:$false] %s986_s25 }
  0xa1   : > { %s988_s1 = scalar_lea.vmem %s987_s25, 768  ;;  %p989_p9 = scmp.lt.s32.totalorder %s1433_s0, %s987_s25 }
  0xa2   : > { %p990_p1 = scmp.lt.s32.totalorder %s988_s1, %s982_s29 }
  0xa4   : > { %p991_p5 = por %p990_p1, %p989_p9 }
  0xa6   : > { %p992_p2 = pnand %p991_p5, %p985_p12 }
  0xa8   : > { %995 = shalt.err (!%p992_p2)
}
  0xa9   : > { %s996_s24 = scalar_lea.hbm %s1427_s26, 384  ;;  %s1000_s11 = scalar_lea.hbm %s1564_s3, 768 }
  0xaa   : > { %p997_p4 = scmp.ne.s32.totalorder %s1427_s26, %s996_s24  ;;  %p1001_p0 = scmp.lt.u32.totalorder %s1427_s26, %s1564_s3 }
  0xab   : > { %p1002_p11 = scmp.lt.u32.totalorder %s1000_s11, %s996_s24  ;;  %p1004_p7 = scmp.lt.u32.totalorder %s996_s24, %s1427_s26 }
  0xac   : > { %p998_p13 = pnand %p997_p4, %p1589_p3 }
  0xad   : > { %p1003_p6 = por %p1002_p11, %p1001_p0 }
  0xae   : > { %p999_p8 = pneg %p998_p13 }
  0xaf   : > { %p1005_p10 = por %p1004_p7, %p1003_p6 }
  0xb1   : > { %p1006_p12 = pnand %p1005_p10, %p999_p8 }
  0xb3   : > { %1009 = shalt.err (!%p1006_p12)
}
  0xb4   : > { %s1590_s1 = smov 8   ;;  %s1591_s29 = smov 128   ;;  %775 = vst [vmem:[%s1430_s14 + $0x8] sm:$0xff] %v432_v40  ;;  %781 = vst [vmem:[%s1430_s14 + $0x10] sm:$0xff] %v452_v41 }
  0xb5   : > { %802 = dma.vmem_to_hbm [thread:$0]  (%p1589_p3), %s1433_s0, 384, %s1427_s26, %s1459_s9, %s1591_s29, %s1591_s29, %s1590_s1  }
  0xb6   : > { %406 = vst [vmem:[%s1412_s12] sm:$0xff] %v402_v42  ;;  %s1010_s25 = scalar_lea.vmem %s1454_s16, 384  ;;  %s1143_s24 = smov [#allocation10]  }
  0xb7   : > { %p1011_p9 = scmp.ne.s32.totalorder %s1454_s16, %s1010_s25  ;;  %s1014_s30 = sshll.u32 %s1143_s24, 4  ;;  %s1015_s30 = int_to_ptr.vmem [resolvable:$false] %s1014_s30 }
  0xb8   : > { %s1016_s13 = scalar_lea.vmem %s1015_s30, 768  ;;  %p1017_p2 = scmp.lt.s32.totalorder %s1454_s16, %s1015_s30 }
  0xb9   : > { %p1012_p1 = pnand %p1011_p9, %p1589_p3  ;;  %p1018_p4 = scmp.lt.s32.totalorder %s1016_s13, %s1010_s25 }
  0xbb   : > { %p1013_p5 = pneg %p1012_p1  ;;  %p1019_p13 = por %p1018_p4, %p1017_p2 }
  0xbd   : > { %p1020_p8 = pnand %p1019_p13, %p1013_p5 }
  0xbf   : > { %1023 = shalt.err (!%p1020_p8)
}
  0xc0   : > { %s1024_s0 = scalar_lea.hbm %s1452_s28, 384  ;;  %s1028_s14 = scalar_lea.hbm %s1565_s4, 768 }
  0xc1   : > { %p1025_p0 = scmp.ne.s32.totalorder %s1452_s28, %s1024_s0  ;;  %p1029_p7 = scmp.lt.u32.totalorder %s1452_s28, %s1565_s4 }
  0xc2   : > { %p1030_p10 = scmp.lt.u32.totalorder %s1028_s14, %s1024_s0  ;;  %p1032_p9 = scmp.lt.u32.totalorder %s1024_s0, %s1452_s28 }
  0xc3   : > { %p1026_p11 = pnand %p1025_p0, %p1589_p3 }
  0xc4   : > { %p1031_p12 = por %p1030_p10, %p1029_p7 }
  0xc5   : > { %p1027_p6 = pneg %p1026_p11 }
  0xc6   : > { %p1033_p1 = por %p1032_p9, %p1031_p12 }
  0xc8   : > { %p1034_p5 = pnand %p1033_p1, %p1027_p6 }
  0xca   : > { %1037 = shalt.err (!%p1034_p5)
}
  0xcb   : > { %803 = dma.vmem_to_hbm [thread:$0]  (%p1589_p3), %s1454_s16, 384, %s1452_s28, %s1459_s9, %s1591_s29, %s1591_s29, %s1590_s1  }
  0xcc   : > { %s463_s15 = scalar_lea.sflag [#allocation4], %s1329_s17  ;;  %s1038_s25 = scalar_lea.vmem %s1444_s10, 128 }
  0xcd   : > { %p1039_p2 = scmp.ne.s32.totalorder %s1444_s10, %s1038_s25  ;;  %s1144_s24 = smov [#allocation7]  }
  0xce   : > { %s1042_s30 = sshll.u32 %s1144_s24, 4  ;;  %s1043_s30 = int_to_ptr.vmem [resolvable:$false] %s1042_s30 }
  0xcf   : > { %p1040_p4 = pnand %p1039_p2, %p1589_p3  ;;  %s1044_s13 = scalar_lea.vmem %s1043_s30, 256 }
  0xd0   : > { %p1045_p8 = scmp.lt.s32.totalorder %s1444_s10, %s1043_s30  ;;  %p1046_p0 = scmp.lt.s32.totalorder %s1044_s13, %s1038_s25 }
  0xd1   : > { %p1041_p13 = pneg %p1040_p4 }
  0xd2   : > { %p1047_p11 = por %p1046_p0, %p1045_p8 }
  0xd4   : > { %p1048_p6 = pnand %p1047_p11, %p1041_p13 }
  0xd6   : > { %1051 = shalt.err (!%p1048_p6)
}
  0xd7   : > { %s1052_s17 = scalar_lea.hbm %s1442_s27, 128  ;;  %s1056_s9 = scalar_lea.hbm %s1563_s2, 256 }
  0xd8   : > { %p1053_p7 = scmp.ne.s32.totalorder %s1442_s27, %s1052_s17  ;;  %p1057_p9 = scmp.lt.u32.totalorder %s1442_s27, %s1563_s2 }
  0xd9   : > { %p1058_p1 = scmp.lt.u32.totalorder %s1056_s9, %s1052_s17  ;;  %p1060_p2 = scmp.lt.u32.totalorder %s1052_s17, %s1442_s27 }
  0xda   : > { %p1054_p10 = pnand %p1053_p7, %p1589_p3 }
  0xdb   : > { %p1059_p5 = por %p1058_p1, %p1057_p9 }
  0xdc   : > { %p1055_p12 = pneg %p1054_p10 }
  0xdd   : > { %p1061_p4 = por %p1060_p2, %p1059_p5 }
  0xdf   : > { %p1062_p13 = pnand %p1061_p4, %p1055_p12 }
  0xe1   : > { %1065 = shalt.err (!%p1062_p13)
}
  0xe2   : > { %801 = dma.vmem_to_hbm [thread:$0]  (%p1589_p3), %s1444_s10, 128, %s1442_s27, %s463_s15  }
  0xe3 PF: > { %s559_s0 = sand.u32 1, %s1112_s18   ;;  %p1592_p8 = scmp.ne.s32.totalorder %s1581_s8, 0 }
  0xe4   : > { %p1593_p0 = scmp.ge.s32.totalorder %s1132_s23, 2  ;;  %s560_s12 = scalar_lea.sflag [#allocation4], %s559_s0 }
  0xe6   : > { %p817_p11 = pnand %p1593_p0, %p1592_p8 }
  0xe8   : > { %1099 = dma.done.wait (!%p817_p11), %s560_s12, 128  }
  0xe9   : > { %1101 = vsyncadd (!%p817_p11), %s560_s12, 4294967168  ;;  %s1594_s26 = sadd.s32 4294967294, %s1132_s23  }
  0xea   : > { %s568_s14 = sand.u32 1, %s1594_s26  }
  0xeb   : > { %s569_s11 = scalar_lea.sflag [#allocation9], %s568_s14 }
  0xec   : > { %1103 = dma.done.wait (!%p817_p11), %s569_s11, 768  }
  0xed   : > { %1105 = vsyncadd (!%p817_p11), %s569_s11, 4294966528  ;;  %s587_s6 = scalar_lea.sflag [#allocation12], %s559_s0 }
  0xee   : > { %1107 = dma.done.wait (!%p817_p11), %s587_s6, 384  }
  0xef   : > { %1109 = vsyncadd (!%p817_p11), %s587_s6, 4294966912  ;;  %s31_s23 = sadd.s32 1, %s1132_s23   ;;  %s1595_s8 = sld [smem:[#allocation18_spill]] }
  0xf0   : > { %p28_p3 = scmp.ge.s32.totalorder %s31_s23, 4   ;;  %s1596_s18 = smov %s1116_s19 }
  0xf1   : > { %s1597_s19 = smov %s1120_s20  ;;  %s1598_s20 = smov %s1237_s7 }
  0xf2   : > { %s1599_s21 = smov %s1128_s22  ;;  %30 = sbr.rel (!%p28_p3) target bundleno = 15 (0xf), region = 147 }
  0xf5   : > { %s1600_s22 = smov %s1595_s8 }
  0xf9   :  { %592 = vsyncpa [#allocation3], 1 }
  0xfa   :  { %594 = vsyncpa [#allocation3 + $0x1], 1 }
  0xfb   :  { %595 = vsyncpa [#allocation6], 1 }
  0xfc   :  { %597 = vsyncpa [#allocation6 + $0x1], 1 }
  0xfd   :  { %598 = vsyncpa [#allocation4], 1 }
  0xfe   :  { %600 = vsyncpa [#allocation4 + $0x1], 1 }
  0xff   :  { %601 = vsyncpa [#allocation9], 1 }
 0x100   :  { %603 = vsyncpa [#allocation9 + $0x1], 1 }
 0x101   :  { %604 = vsyncpa [#allocation12], 1 }
 0x102   :  { %606 = vsyncpa [#allocation12 + $0x1], 1 }

</bundles_post_ra>
